<compile_context>
chip_gen: v6e
topology: v6e:2x2x1
jax: 0.10.0
libtpu: 0.0.40
codegen_flags: <defaults>
</compile_context>

<pallas_src>
import jax
import jax.numpy as jnp
import numpy as np
from jax.experimental import pallas as pl
from jax.experimental.pallas import tpu as pltpu


# ----------------------------------------------------------------------------
# Kernel
# ----------------------------------------------------------------------------
def _make_kernel(emb, block_b, n_convs):
    def kernel(x_ref, w_all_ref, b_all_ref, wo_fb_ref, b_fused_ref,
               cw_ref, cb_ref, out_ref):
        # Load shared (tiny) weights once per grid step.
        w_all = w_all_ref[...]       # (3*emb + c_out, C_in)
        b_all = b_all_ref[...]       # (3*emb + c_out, 1)
        wo_fb = wo_fb_ref[...]       # (c_out, emb)  bn0/conv1/bn1/out_fc folded
        b_fused = b_fused_ref[...]   # (c_out, 1)

        for b in range(block_b):
            x = x_ref[b]             # (C_in, N) channels-first, lane-dense

            # One MXU push produces Q, K, V and the folded m1 fusion term.
            y = jnp.dot(w_all, x, preferred_element_type=jnp.float32) + b_all
            q = y[0:emb]                       # (emb, N)  (pre-scaled by 1/sqrt(emb))
            k = y[emb:2 * emb]                 # (emb, N)
            v = y[2 * emb:3 * emb]             # (emb, N)
            m1_fuse = y[3 * emb:]              # (c_out, N)

            # affinity = <Q, K>, lane-dense (1, N); unrolled VPU FMAs over the
            # small emb dimension (avoids XLU column reduce).
            if emb <= 16:
                aff = q[0:1] * k[0:1]
                for r in range(1, emb):
                    aff = aff + q[r:r + 1] * k[r:r + 1]
            else:
                aff = jnp.sum(q * k, axis=0, keepdims=True)

            # softmax over the sequence (lane) axis; dropout == identity.
            aff = aff - jnp.max(aff, axis=-1, keepdims=True)
            e = jnp.exp(aff)
            w = e / jnp.sum(e, axis=-1, keepdims=True)            # (1, N)

            # h = relu1( bn1( conv1( bn0( fusion_fc([m1, out_fc(w*V)]) ) ) ) )
            # with bn0/conv1/bn1/out_fc all folded; v_proj never materialized.
            h = (m1_fuse
                 + jnp.dot(wo_fb, w * v, preferred_element_type=jnp.float32)
                 + b_fused)
            h = jnp.maximum(h, 0.0)

            # Remaining conv_i (1x1) + bn_i (folded) + ReLU stages, unrolled.
            for i in range(n_convs):
                h = (jnp.dot(cw_ref[i], h,
                             preferred_element_type=jnp.float32)
                     + cb_ref[i])
                h = jnp.maximum(h, 0.0)

            out_ref[b] = h           # lane-dense (c_out, N) store

    return kernel


def _choose_block_b(B, per_item_bytes, vmem_budget=2 << 20):
    """Largest divisor of B that keeps the grid length >= 2 (megacore) and the
    per-step activation footprint under a small VMEM budget."""
    best = 1
    for d in range(1, B + 1):
        if B % d:
            continue
        if B >= 2 and B // d < 2:
            continue
        if d * per_item_bytes > vmem_budget:
            continue
        best = max(best, d)
    return best


def learnable_align_transform_queries(x_nchw, params, block_b=None):
    B, C_in, H, W = x_nchw.shape
    N = H * W
    c_out = params["wo_fb"].shape[0]
    emb = (params["w_all"].shape[0] - c_out) // 3
    n_convs = params["cw"].shape[0]

    if block_b is None:
        block_b = _choose_block_b(B, N * (C_in + c_out) * 4)
    assert B % block_b == 0
    grid_b = B // block_b

    # Channels-first flatten: a pure reshape of NCHW, no transpose / HBM copy.
    x = x_nchw.reshape(B, C_in, N)

    # TODO(synk): for very large H*W, tile N with a two-pass/online softmax
    # (full-N residency is the only constraint; matters first on v7x 64MiB VMEM).

    param_order = ["w_all", "b_all", "wo_fb", "b_fused", "cw", "cb"]
    param_args = [params[name] for name in param_order]

    def full_spec(arr):
        nd = arr.ndim
        return pl.BlockSpec(arr.shape, lambda i, _nd=nd: (0,) * _nd)

    in_specs = [pl.BlockSpec((block_b, C_in, N), lambda i: (i, 0, 0))]
    in_specs += [full_spec(p) for p in param_args]

    out = pl.pallas_call(
        _make_kernel(emb, block_b, n_convs),
        out_shape=jax.ShapeDtypeStruct((B, c_out, N), jnp.float32),
        grid=(grid_b,),
        in_specs=in_specs,
        out_specs=pl.BlockSpec((block_b, c_out, N), lambda i: (i, 0, 0)),
        compiler_params=pltpu.CompilerParams(
            dimension_semantics=("parallel",)),
    )(x, *param_args)

    # Pure reshape back to NCHW (already channels-first).
    return out.reshape(B, c_out, H, W)


# ----------------------------------------------------------------------------
# Parameters (PyTorch-style raw params + folding into kernel params)
# ----------------------------------------------------------------------------
def init_raw_params(key, in_channels, out_channels):
    """PyTorch-layout parameters: Linear weights are (out, in)."""
    c_half = in_channels // 2
    emb = c_half
    keys = jax.random.split(key, 16)

    def lin(k, fan_in, fan_out):
        kw, kb = jax.random.split(k)
        bound = 1.0 / np.sqrt(fan_in)
        w = jax.random.uniform(kw, (fan_out, fan_in), jnp.float32, -bound, bound)
        b = jax.random.uniform(kb, (fan_out,), jnp.float32, -bound, bound)
        return w, b

    wq, bq = lin(keys[0], c_half, emb)
    wk, bk = lin(keys[1], c_half, emb)
    wv, bv = lin(keys[2], c_half, emb)
    wo, bo = lin(keys[3], emb, out_channels)
    wf, bf = lin(keys[4], c_half + emb, out_channels)
    convs = [lin(keys[5 + i], out_channels, out_channels) for i in range(3)]

    bn = []
    for i in range(4):
        kg, kb2, km, kv2 = jax.random.split(keys[9 + i], 4)
        gamma = jax.random.uniform(kg, (out_channels,), jnp.float32, 0.5, 1.5)
        beta = jax.random.uniform(kb2, (out_channels,), jnp.float32, -0.5, 0.5)
        mean = jax.random.uniform(km, (out_channels,), jnp.float32, -0.5, 0.5)
        var = jax.random.uniform(kv2, (out_channels,), jnp.float32, 0.5, 1.5)
        bn.append((gamma, beta, mean, var))

    return dict(wq=wq, bq=bq, wk=wk, bk=bk, wv=wv, bv=bv, wo=wo, bo=bo,
                wf=wf, bf=bf,
                conv_w=[w for w, _ in convs], conv_b=[b for _, b in convs],
                bn=bn, c_half=c_half, emb=emb, c_out=out_channels)


def fold_params(raw, eps=1e-5):
    """Fold BNs into weights, out_fc into fusion_fc, bn0+conv1+bn1 into the
    fusion weights, and pack Q/K/V/fusion into a single channels-first matrix.
    The 1/sqrt(emb) affinity scale is folded into the Q projection."""
    c_half, emb, c_out = raw["c_half"], raw["emb"], raw["c_out"]

    def bn_scale_shift(i):
        gamma, beta, mean, var = raw["bn"][i]
        s = gamma * jax.lax.rsqrt(var + eps)
        return s, beta - mean * s

    s0, t0 = bn_scale_shift(0)   # self.bn   (after fusion_fc)
    s1, t1 = bn_scale_shift(1)   # self.bn1  (after conv1)

    wfa = raw["wf"][:, :c_half]                 # (c_out, c_half)
    wfb = raw["wf"][:, c_half:]                 # (c_out, emb)

    # out_fc folded into fusion_fc: Wfb @ (Wo v + bo) = (Wfb@Wo) v + Wfb@bo.
    wo_fb = wfb @ raw["wo"]                     # (c_out, emb)
    b_pre = wfb @ raw["bo"] + raw["bf"]         # (c_out,)

    # No nonlinearity between bn0, conv1, bn1 -> fold the whole affine chain
    # into a single matrix M = diag(s1) @ Wc1 @ diag(s0).
    wc1, bc1 = raw["conv_w"][0], raw["conv_b"][0]
    M = (s1[:, None] * wc1) * s0[None, :]       # (c_out, c_out)

    w_m1 = M @ wfa                              # (c_out, c_half)
    wo_fb_f = M @ wo_fb                         # (c_out, emb)
    b_fused = M @ b_pre + s1 * (wc1 @ t0 + bc1) + t1

    # Affinity scale folded into Q.
    inv = 1.0 / np.sqrt(float(emb))
    wq = raw["wq"] * inv
    bq = raw["bq"] * inv

    z = jnp.zeros((emb, c_half), jnp.float32)
    # Combined channels-first weight on the full (C_in, N) input:
    #   rows [0:emb)           -> Q   (modality 1 columns, pre-scaled)
    #   rows [emb:2emb)        -> K   (modality 2 columns)
    #   rows [2emb:3emb)       -> V   (modality 2 columns)
    #   rows [3emb:3emb+c_out) -> folded fusion_fc[:, :c_half] (modality 1)
    w_all = jnp.concatenate([
        jnp.concatenate([wq, z], axis=1),
        jnp.concatenate([z, raw["wk"]], axis=1),
        jnp.concatenate([z, raw["wv"]], axis=1),
        jnp.concatenate([w_m1, jnp.zeros((c_out, c_half), jnp.float32)],
                        axis=1),
    ], axis=0)                                                  # (3e+o, C_in)
    b_all = jnp.concatenate(
        [bq, raw["bk"], raw["bv"], jnp.zeros((c_out,), jnp.float32)]
    )[:, None]                                                  # (3e+o, 1)

    # bn{2,3} folded into conv{2,3} (the only remaining conv stages).
    cw, cb = [], []
    for i in (1, 2):
        s, t = bn_scale_shift(i + 1)
        cw.append(s[:, None] * raw["conv_w"][i])
        cb.append((s * raw["conv_b"][i] + t)[:, None])
    cw = jnp.stack(cw)                          # (2, c_out, c_out)
    cb = jnp.stack(cb)                          # (2, c_out, 1)

    return dict(w_all=w_all, b_all=b_all, wo_fb=wo_fb_f,
                b_fused=b_fused[:, None], cw=cw, cb=cb)


# ----------------------------------------------------------------------------
# Pure-JAX reference (mirrors the PyTorch forward, no folding)
# ----------------------------------------------------------------------------
def reference(x_nchw, raw, eps=1e-5):
    B, C_in, H, W = x_nchw.shape
    c_half = raw["c_half"]
    xf = jnp.transpose(x_nchw, (0, 2, 3, 1)).reshape(B, H * W, C_in)
    m1, m2 = xf[..., :c_half], xf[..., c_half:]
    q = m1 @ raw["wq"].T + raw["bq"]
    k = m2 @ raw["wk"].T + raw["bk"]
    v = m2 @ raw["wv"].T + raw["bv"]
    aff = jnp.sum(q * k, -1, keepdims=True) / jnp.sqrt(jnp.float32(q.shape[-1]))
    w = jax.nn.softmax(aff, axis=1)
    v_proj = (w * v) @ raw["wo"].T + raw["bo"]
    fused = jnp.concatenate([m1, v_proj], axis=-1) @ raw["wf"].T + raw["bf"]

    def bn_apply(h, i):
        g, b_, m, var = raw["bn"][i]
        return (h - m) * jax.lax.rsqrt(var + eps) * g + b_

    h = bn_apply(fused, 0)
    for i in range(3):
        h = h @ raw["conv_w"][i].T + raw["conv_b"][i]
        h = bn_apply(h, i + 1)
        h = jnp.maximum(h, 0.0)
    return jnp.transpose(h.reshape(B, H, W, -1), (0, 3, 1, 2))


if __name__ == "__main__":
    # Module requires out_channels == in_channels // 2 (final view in forward).
    in_channels, out_channels = 8, 4
    B, H, W = 2, 16, 16

    key = jax.random.PRNGKey(0)
    kx, kp = jax.random.split(key)
    x = jax.random.normal(kx, (B, in_channels, H, W), jnp.float32)
    raw = init_raw_params(kp, in_channels, out_channels)
    params = fold_params(raw)

    out = learnable_align_transform_queries(x, params)
    out = jax.block_until_ready(out)

    ref = reference(x, raw)
    np.testing.assert_allclose(np.asarray(out), np.asarray(ref),
                               rtol=1e-4, atol=5e-5)
    assert out.shape == (B, out_channels, H, W)
    print("KERNEL_OK")
</pallas_src>

<mosaic_0001>
module attributes {stable_mosaic.version = 11 : i64} {
  func.func @kernel(%arg0: i32, %arg1: memref<1x8x256xf32, #tpu.memory_space<vmem>>, %arg2: memref<16x8xf32, #tpu.memory_space<vmem>>, %arg3: memref<16x1xf32, #tpu.memory_space<vmem>>, %arg4: memref<4x4xf32, #tpu.memory_space<vmem>>, %arg5: memref<4x1xf32, #tpu.memory_space<vmem>>, %arg6: memref<2x4x4xf32, #tpu.memory_space<vmem>>, %arg7: memref<2x4x1xf32, #tpu.memory_space<vmem>>, %arg8: memref<1x4x256xf32, #tpu.memory_space<vmem>>) attributes {dimension_semantics = [#tpu.dimension_semantics<parallel>], iteration_bounds = array<i64: 2>, scalar_prefetch = 0 : i64, scratch_operands = 0 : i64, tpu.core_type = #tpu.core_type<tc>, window_params = [{transform_indices = @transform_0, window_bounds = array<i64: 1, 8, 256>}, {pipeline_mode = #tpu.pipeline_mode<synchronous>, transform_indices = @transform_1, window_bounds = array<i64: 16, 8>}, {pipeline_mode = #tpu.pipeline_mode<synchronous>, transform_indices = @transform_2, window_bounds = array<i64: 16, 1>}, {pipeline_mode = #tpu.pipeline_mode<synchronous>, transform_indices = @transform_3, window_bounds = array<i64: 4, 4>}, {pipeline_mode = #tpu.pipeline_mode<synchronous>, transform_indices = @transform_4, window_bounds = array<i64: 4, 1>}, {pipeline_mode = #tpu.pipeline_mode<synchronous>, transform_indices = @transform_5, window_bounds = array<i64: 2, 4, 4>}, {pipeline_mode = #tpu.pipeline_mode<synchronous>, transform_indices = @transform_6, window_bounds = array<i64: 2, 4, 1>}, {transform_indices = @transform_7, window_bounds = array<i64: 1, 4, 256>}]} {
    %c0 = arith.constant 0 : index
    %c0_0 = arith.constant 0 : index
    %0 = vector.load %arg2[%c0, %c0_0] : memref<16x8xf32, #tpu.memory_space<vmem>>, vector<16x8xf32>
    %c0_1 = arith.constant 0 : index
    %c0_2 = arith.constant 0 : index
    %1 = vector.load %arg3[%c0_1, %c0_2] : memref<16x1xf32, #tpu.memory_space<vmem>>, vector<16x1xf32>
    %c0_3 = arith.constant 0 : index
    %c0_4 = arith.constant 0 : index
    %2 = vector.load %arg4[%c0_3, %c0_4] : memref<4x4xf32, #tpu.memory_space<vmem>>, vector<4x4xf32>
    %c0_5 = arith.constant 0 : index
    %c0_6 = arith.constant 0 : index
    %3 = vector.load %arg5[%c0_5, %c0_6] : memref<4x1xf32, #tpu.memory_space<vmem>>, vector<4x1xf32>
    %c0_7 = arith.constant 0 : index
    %c0_8 = arith.constant 0 : index
    %c0_9 = arith.constant 0 : index
    %4 = vector.load %arg1[%c0_7, %c0_8, %c0_9] : memref<1x8x256xf32, #tpu.memory_space<vmem>>, vector<1x8x256xf32>
    %5 = vector.shape_cast %4 : vector<1x8x256xf32> to vector<8x256xf32>
    %cst = arith.constant dense<0.000000e+00> : vector<16x256xf32>
    %6 = tpu.matmul %0, %5, %cst {dimension_numbers = #tpu.dot_dimension_numbers<[1], [0], [0], [1], [0, 0, 1, 1], [], []>} : vector<16x8xf32>, vector<8x256xf32>, vector<16x256xf32> -> vector<16x256xf32>
    %7 = vector.broadcast %1 : vector<16x1xf32> to vector<16x256xf32>
    %8 = arith.addf %6, %7 : vector<16x256xf32>
    %9 = vector.extract_strided_slice %8 {offsets = [0, 0], sizes = [4, 256], strides = [1, 1]} : vector<16x256xf32> to vector<4x256xf32>
    %10 = vector.extract_strided_slice %8 {offsets = [4, 0], sizes = [4, 256], strides = [1, 1]} : vector<16x256xf32> to vector<4x256xf32>
    %11 = vector.extract_strided_slice %8 {offsets = [8, 0], sizes = [4, 256], strides = [1, 1]} : vector<16x256xf32> to vector<4x256xf32>
    %12 = vector.extract_strided_slice %8 {offsets = [12, 0], sizes = [4, 256], strides = [1, 1]} : vector<16x256xf32> to vector<4x256xf32>
    %13 = vector.extract_strided_slice %9 {offsets = [0, 0], sizes = [1, 256], strides = [1, 1]} : vector<4x256xf32> to vector<1x256xf32>
    %14 = vector.extract_strided_slice %10 {offsets = [0, 0], sizes = [1, 256], strides = [1, 1]} : vector<4x256xf32> to vector<1x256xf32>
    %15 = arith.mulf %13, %14 : vector<1x256xf32>
    %16 = vector.extract_strided_slice %9 {offsets = [1, 0], sizes = [1, 256], strides = [1, 1]} : vector<4x256xf32> to vector<1x256xf32>
    %17 = vector.extract_strided_slice %10 {offsets = [1, 0], sizes = [1, 256], strides = [1, 1]} : vector<4x256xf32> to vector<1x256xf32>
    %18 = arith.mulf %16, %17 : vector<1x256xf32>
    %19 = arith.addf %15, %18 : vector<1x256xf32>
    %20 = vector.extract_strided_slice %9 {offsets = [2, 0], sizes = [1, 256], strides = [1, 1]} : vector<4x256xf32> to vector<1x256xf32>
    %21 = vector.extract_strided_slice %10 {offsets = [2, 0], sizes = [1, 256], strides = [1, 1]} : vector<4x256xf32> to vector<1x256xf32>
    %22 = arith.mulf %20, %21 : vector<1x256xf32>
    %23 = arith.addf %19, %22 : vector<1x256xf32>
    %24 = vector.extract_strided_slice %9 {offsets = [3, 0], sizes = [1, 256], strides = [1, 1]} : vector<4x256xf32> to vector<1x256xf32>
    %25 = vector.extract_strided_slice %10 {offsets = [3, 0], sizes = [1, 256], strides = [1, 1]} : vector<4x256xf32> to vector<1x256xf32>
    %26 = arith.mulf %24, %25 : vector<1x256xf32>
    %27 = arith.addf %23, %26 : vector<1x256xf32>
    %cst_10 = arith.constant dense<0xFF800000> : vector<1xf32>
    %28 = vector.multi_reduction <maximumf>, %27, %cst_10 [1] : vector<1x256xf32> to vector<1xf32>
    %29 = vector.shape_cast %28 : vector<1xf32> to vector<1x1xf32>
    %30 = vector.broadcast %29 : vector<1x1xf32> to vector<1x256xf32>
    %31 = arith.subf %27, %30 : vector<1x256xf32>
    %32 = math.exp %31 : vector<1x256xf32>
    %cst_11 = arith.constant dense<0.000000e+00> : vector<1xf32>
    %33 = vector.multi_reduction <add>, %32, %cst_11 [1] : vector<1x256xf32> to vector<1xf32>
    %34 = vector.shape_cast %33 : vector<1xf32> to vector<1x1xf32>
    %35 = vector.broadcast %34 : vector<1x1xf32> to vector<1x256xf32>
    %36 = arith.divf %32, %35 : vector<1x256xf32>
    %37 = vector.broadcast %36 : vector<1x256xf32> to vector<4x256xf32>
    %38 = arith.mulf %37, %11 : vector<4x256xf32>
    %cst_12 = arith.constant dense<0.000000e+00> : vector<4x256xf32>
    %39 = tpu.matmul %2, %38, %cst_12 {dimension_numbers = #tpu.dot_dimension_numbers<[1], [0], [0], [1], [0, 0, 1, 1], [], []>} : vector<4x4xf32>, vector<4x256xf32>, vector<4x256xf32> -> vector<4x256xf32>
    %40 = arith.addf %12, %39 : vector<4x256xf32>
    %41 = vector.broadcast %3 : vector<4x1xf32> to vector<4x256xf32>
    %42 = arith.addf %40, %41 : vector<4x256xf32>
    %cst_13 = arith.constant 0.000000e+00 : f32
    %43 = vector.broadcast %cst_13 : f32 to vector<4x256xf32>
    %44 = arith.maximumf %42, %43 : vector<4x256xf32>
    %c0_14 = arith.constant 0 : index
    %c0_15 = arith.constant 0 : index
    %c0_16 = arith.constant 0 : index
    %45 = vector.load %arg6[%c0_14, %c0_15, %c0_16] : memref<2x4x4xf32, #tpu.memory_space<vmem>>, vector<1x4x4xf32>
    %46 = vector.shape_cast %45 : vector<1x4x4xf32> to vector<4x4xf32>
    %cst_17 = arith.constant dense<0.000000e+00> : vector<4x256xf32>
    %47 = tpu.matmul %46, %44, %cst_17 {dimension_numbers = #tpu.dot_dimension_numbers<[1], [0], [0], [1], [0, 0, 1, 1], [], []>} : vector<4x4xf32>, vector<4x256xf32>, vector<4x256xf32> -> vector<4x256xf32>
    %c0_18 = arith.constant 0 : index
    %c0_19 = arith.constant 0 : index
    %c0_20 = arith.constant 0 : index
    %48 = vector.load %arg7[%c0_18, %c0_19, %c0_20] : memref<2x4x1xf32, #tpu.memory_space<vmem>>, vector<1x4x1xf32>
    %49 = vector.shape_cast %48 : vector<1x4x1xf32> to vector<4x1xf32>
    %50 = vector.broadcast %49 : vector<4x1xf32> to vector<4x256xf32>
    %51 = arith.addf %47, %50 : vector<4x256xf32>
    %cst_21 = arith.constant 0.000000e+00 : f32
    %52 = vector.broadcast %cst_21 : f32 to vector<4x256xf32>
    %53 = arith.maximumf %51, %52 : vector<4x256xf32>
    %c1 = arith.constant 1 : index
    %c0_22 = arith.constant 0 : index
    %c0_23 = arith.constant 0 : index
    %54 = vector.load %arg6[%c1, %c0_22, %c0_23] : memref<2x4x4xf32, #tpu.memory_space<vmem>>, vector<1x4x4xf32>
    %55 = vector.shape_cast %54 : vector<1x4x4xf32> to vector<4x4xf32>
    %cst_24 = arith.constant dense<0.000000e+00> : vector<4x256xf32>
    %56 = tpu.matmul %55, %53, %cst_24 {dimension_numbers = #tpu.dot_dimension_numbers<[1], [0], [0], [1], [0, 0, 1, 1], [], []>} : vector<4x4xf32>, vector<4x256xf32>, vector<4x256xf32> -> vector<4x256xf32>
    %c1_25 = arith.constant 1 : index
    %c0_26 = arith.constant 0 : index
    %c0_27 = arith.constant 0 : index
    %57 = vector.load %arg7[%c1_25, %c0_26, %c0_27] : memref<2x4x1xf32, #tpu.memory_space<vmem>>, vector<1x4x1xf32>
    %58 = vector.shape_cast %57 : vector<1x4x1xf32> to vector<4x1xf32>
    %59 = vector.broadcast %58 : vector<4x1xf32> to vector<4x256xf32>
    %60 = arith.addf %56, %59 : vector<4x256xf32>
    %cst_28 = arith.constant 0.000000e+00 : f32
    %61 = vector.broadcast %cst_28 : f32 to vector<4x256xf32>
    %62 = arith.maximumf %60, %61 : vector<4x256xf32>
    %c0_29 = arith.constant 0 : index
    %c0_30 = arith.constant 0 : index
    %c0_31 = arith.constant 0 : index
    %63 = vector.load %arg8[%c0_29, %c0_30, %c0_31] : memref<1x4x256xf32, #tpu.memory_space<vmem>>, vector<1x4x256xf32>
    %64 = vector.shape_cast %63 : vector<1x4x256xf32> to vector<4x256xf32>
    %65 = vector.shape_cast %62 : vector<4x256xf32> to vector<1x4x256xf32>
    tpu.vector_store %arg8[%c0_29, %c0_30, %c0_31], %65 {strides = array<i32>} : memref<1x4x256xf32, #tpu.memory_space<vmem>>, vector<1x4x256xf32>,
    return
  }
  func.func @transform_0(%arg0: i32) -> (i32, i32, i32) {
    %c0_i32 = arith.constant 0 : i32
    %c0_i32_0 = arith.constant 0 : i32
    %c0_i32_1 = arith.constant 0 : i32
    return %arg0, %c0_i32, %c0_i32_0 : i32, i32, i32
  }
  func.func @transform_1(%arg0: i32) -> (i32, i32) {
    %c0_i32 = arith.constant 0 : i32
    %c0_i32_0 = arith.constant 0 : i32
    %c0_i32_1 = arith.constant 0 : i32
    return %c0_i32, %c0_i32_0 : i32, i32
  }
  func.func @transform_2(%arg0: i32) -> (i32, i32) {
    %c0_i32 = arith.constant 0 : i32
    %c0_i32_0 = arith.constant 0 : i32
    %c0_i32_1 = arith.constant 0 : i32
    return %c0_i32, %c0_i32_0 : i32, i32
  }
  func.func @transform_3(%arg0: i32) -> (i32, i32) {
    %c0_i32 = arith.constant 0 : i32
    %c0_i32_0 = arith.constant 0 : i32
    %c0_i32_1 = arith.constant 0 : i32
    return %c0_i32, %c0_i32_0 : i32, i32
  }
  func.func @transform_4(%arg0: i32) -> (i32, i32) {
    %c0_i32 = arith.constant 0 : i32
    %c0_i32_0 = arith.constant 0 : i32
    %c0_i32_1 = arith.constant 0 : i32
    return %c0_i32, %c0_i32_0 : i32, i32
  }
  func.func @transform_5(%arg0: i32) -> (i32, i32, i32) {
    %c0_i32 = arith.constant 0 : i32
    %c0_i32_0 = arith.constant 0 : i32
    %c0_i32_1 = arith.constant 0 : i32
    %c0_i32_2 = arith.constant 0 : i32
    return %c0_i32, %c0_i32_0, %c0_i32_1 : i32, i32, i32
  }
  func.func @transform_6(%arg0: i32) -> (i32, i32, i32) {
    %c0_i32 = arith.constant 0 : i32
    %c0_i32_0 = arith.constant 0 : i32
    %c0_i32_1 = arith.constant 0 : i32
    %c0_i32_2 = arith.constant 0 : i32
    return %c0_i32, %c0_i32_0, %c0_i32_1 : i32, i32, i32
  }
  func.func @transform_7(%arg0: i32) -> (i32, i32, i32) {
    %c0_i32 = arith.constant 0 : i32
    %c0_i32_0 = arith.constant 0 : i32
    %c0_i32_1 = arith.constant 0 : i32
    return %arg0, %c0_i32, %c0_i32_0 : i32, i32, i32
  }
}

</mosaic_0001>

<bundles_post_ra>
// kernel: tpu_custom_call.1
= control target key start
LH: loop header
LB: loop body
LE: loop exit
PB: predicated region body
PF: predicated region fallthrough
CT: control target
= control target key end

     0   :  { %12 = vsyncpa [#allocation3], 0  ;;  %s1114_s0 = inlined_call_operand.vmem [shape: f32[2,8,256], index: 0, kind: input, shape index: {}]   ;;  %s1115_s1 = inlined_call_operand.vmem [shape: f32[16,8], index: 1, kind: input, shape index: {}]   ;;  %s1116_s2 = inlined_call_operand.vmem [shape: f32[16,1], index: 2, kind: input, shape index: {}]   ;;  %s1117_s3 = inlined_call_operand.vmem [shape: f32[4,4], index: 3, kind: input, shape index: {}]   ;;  %s1118_s4 = inlined_call_operand.vmem [shape: f32[4,1], index: 4, kind: input, shape index: {}]   ;;  %s1119_s5 = inlined_call_operand.vmem [shape: f32[2,4,4], index: 5, kind: input, shape index: {}]   ;;  %s1120_s6 = inlined_call_operand.vmem [shape: f32[2,4,1], index: 6, kind: input, shape index: {}]   ;;  %s1121_s7 = inlined_call_operand.hbm [shape: f32[2,4,256], index: 7, kind: output, shape index: {}]  }
   0x1   :  { %14 = vsyncpa [#allocation3 + $0x1], 0  ;;  %s979_s24 = smov 0   ;;  %s981_s25 = smov 0  }
   0x2   :  { %s983_s26 = smov 0   ;;  %s985_s27 = smov 0  }
   0x3 LB: > { %s1000_s28 = sadd.s32 4294967295, %s934_s27   ;;  %s798_s29 = sadd.s32 4294967294, %s934_s27   ;;  %s934_s27 = sphi %s985_s27, %s1127_s27   ;;  %s930_s26 = sphi %s983_s26, %s1126_s26   ;;  %s926_s25 = sphi %s981_s25, %s1125_s25   ;;  %s922_s24 = sphi %s979_s24, %s1124_s24  }
   0x4   : > { %s1004_s30 = sadd.s32 1, %s934_s27   ;;  %s179_s8 = sadd.s32 1, %s930_s26 }
   0x5   : > { %s176_s9 = ssub.s32 %s934_s27, %s1004_s30  ;;  %p189_p0 = scmp.ne.s32.totalorder %s930_s26, %s926_s25 }
   0x6   : > { %p177_p1 = scmp.eq.s32.totalorder %s176_s9, 0  ;;  %p190_p2 = scmp.eq.s32.totalorder %s1000_s28, 1 }
   0x7   : > { %p195_p3 = scmp.ne.s32.totalorder %s926_s25, %s922_s24  ;;  %p196_p4 = scmp.eq.s32.totalorder %s798_s29, 1 }
   0x8   : > { %s1015_s10 = scalar_select %p177_p1, %s930_s26, %s179_s8  }
   0x9   : > { %p1017_p5 = por %p190_p2, %p189_p0  ;;  %p1021_p6 = por %p196_p4, %p195_p3 }
   0xa   : > { %p801_p7 = scmp.ge.s32.totalorder %s934_s27, 1  ;;  %p240_p8 = scmp.lt.s32.totalorder %s934_s27, 3 }
   0xc   : > { %p241_p9 = pnand %p801_p7, %p240_p8 }
   0xd   : > { %p272_p10 = scmp.lt.s32.totalorder (!%p241_p9), %s1000_s28, 1  ;;  %s269_s29 = sand.u32 (!%p241_p9), 1, %s926_s25  }
   0xe   : > { %244 = sbr.rel (%p241_p9) target bundleno = 1180 (0x49c), region = 48  ;;  %s802_s8 = sshll.u32 (!%p241_p9), %s269_s29, 3 }
   0xf   : > { %s824_s9 = sshll.u32 (!%p241_p9), %s1000_s28, 7  ;;  %s271_s13 = scalar_lea.vmem (!%p241_p9), [#allocation2], %s802_s8 }
  0x10   : > { %s739_s14 = sshll.u32 (!%p241_p9), %s271_s13, 4  ;;  %s737_s17 = scalar_lea.hbm (!%p241_p9), %s1121_s7, %s824_s9  ;;  %s740_s14 = int_to_ptr.vmem [resolvable:$true] %s739_s14 }
  0x11   : > { %s725_s18 = scalar_lea.sflag (!%p241_p9), [#allocation3], %s269_s29  ;;  %s938_s20 = smov (!%p241_p9), [#allocation2]  }
  0x12   : > { %s878_s21 = sshll.u32 (!%p241_p9), %s938_s20, 4  ;;  %s879_s21 = int_to_ptr.vmem [resolvable:$false] %s878_s21 }
  0x13   : > { %v279_v0 = vld [vmem:[%s1116_s2] sm:$0xff]  ;;  %v936_v1 = vmov 0.0   ;;  %v937_v2 = vmov 0   ;;  %s273_s15 = scalar_select %p272_p10, %s1000_s28, 1  ;;  %vm295_vm0 = vcmask 64512   ;;  %v278_v6 = vld [vmem:[%s1115_s1 + $0x8] sm:$0xff]  ;;  %v427_v46 = vlaneseq }
  0x14   : > { %366 = vmatprep.mubr.f32.mxu0 %v936_v1  ;;  %866 = vset.pattern.permute.xlu0 %v937_v2  ;;  %v277_v5 = vld [vmem:[%s1115_s1] sm:$0xff]  ;;  %vm407_vm1 = vcmask 1040384   ;;  %v280_v41 = vld [vmem:[%s1116_s2 + $0x8] sm:$0xff]  ;;  %vm441_vm2 = vcmask 1043456   ;;  %vm437_vm3 = vcmask 31744   ;;  %s880_s28 = scalar_lea.vmem %s879_s21, 256  ;;  %p881_p0 = scmp.lt.s32.totalorder %s740_s14, %s879_s21 }
  0x15   : > { %287 = vperm.xlu0 %866, %v279_v0   ;;  %867 = vset.pattern.permute.xlu1 %v937_v2  ;;  %s823_s16 = sshll.u32 %s273_s15, 4  ;;  %v282_v42 = vld [vmem:[%s1118_s4] sm:$0xf]  ;;  %v814_v44 = vld [vmem:[%s1120_s6 + $0x4] sm:$0xf]  ;;  %v428_v47 = vshrl.u32 %v427_v46, 7 }
  0x16   : > { %512 = vmatprep.mubr.f32.mxu1 %v936_v1  ;;  %s276_s19 = scalar_lea.vmem %s1114_s0, %s823_s16  ;;  %v538_v43 = vld [vmem:[%s1120_s6] sm:$0xf] }
  0x17   : > { %v284_v3 = vld [vmem:[%s276_s19 + $0x8] sm:$0xff]  ;;  %v283_v4 = vld [vmem:[%s276_s19] sm:$0xff]  ;;  %v429_v49 = vsub.s32 0, %v428_v47  ;;  %s874_s19 = scalar_lea.vmem %s740_s14, 128 }
  0x18   : > { %332 = vmatprep.subr.mxu0 %v284_v3  ;;  %v281_v61 = vld [vmem:[%s1117_s3] sm:$0xf]  ;;  %p875_p11 = scmp.ne.s32.totalorder %s740_s14, %s874_s19  ;;  %p882_p1 = scmp.lt.s32.totalorder %s880_s28, %s874_s19 }
  0x19   : > { %333 = vmatpush1.msra.mxu0 %v283_v4 }
  0x1a   : > { %805 = vmatmul.mubr.msk.f32.vlgmr.msra.gmra.mxu0 %vm295_vm0, %v277_v5  ;;  %p876_p12 = pnand %p875_p11, %p1017_p5  ;;  %p883_p2 = por %p882_p1, %p881_p0 }
  0x1b   : > { %372 = vmatprep.mubr.f32.mxu0 %v936_v1 }
  0x1c   : > { %p877_p13 = pneg %p876_p12 }
  0x1e   : > { %806 = vmatmul.mubr.msk.f32.gmra.mxu0 %vm295_vm0, %v278_v6  ;;  %p884_p3 = pnand %p883_p2, %p877_p13 }
  0x1f   : > { %710 = vmatprep.mubr.f32.mxu0 %v936_v1 }
  0x90   : > { %v288_v7 = vpop.permute.xlu0 %287 }
  0xda   : > { %v368_v8 = vpop.f32.mrf.mxu0 }
  0xdb   : > { %v369_v9 = vadd.f32 %v368_v8, %v288_v7 }
  0xdc   : > { %v370_v10 = vpop.f32.mrf.mxu0 }
  0xdd   : > { %v381_v11 = vrot.slane %v369_v9, 4  ;;  %v371_v12 = vadd.f32 %v370_v10, %v288_v7 }
  0xde   : > { %v374_v48 = vpop.f32.mrf.mxu0 }
  0xdf   : > { %v385_v13 = vmul.f32 %v381_v11, %v369_v9  ;;  %v382_v14 = vrot.slane %v371_v12, 4 }
  0xe0   : > { %v376_v51 = vpop.f32.mrf.mxu0 }
  0xe1   : > { %v386_v15 = vmul.f32 %v382_v14, %v371_v12  ;;  %v389_v16 = vrot.slane %v385_v13, 1  ;;  %v395_v19 = vrot.slane %v385_v13, 2  ;;  %v401_v23 = vrot.slane %v385_v13, 3 }
  0xe3   : > { %v390_v17 = vrot.slane %v386_v15, 1  ;;  %v393_v18 = vadd.f32 %v389_v16, %v385_v13  ;;  %v396_v21 = vrot.slane %v386_v15, 2  ;;  %v402_v25 = vrot.slane %v386_v15, 3  ;;  %v537_v13 = vld [vmem:[%s1119_s5] sm:$0xf] }
  0xe5   : > { %v394_v20 = vadd.f32 %v390_v17, %v386_v15  ;;  %v399_v22 = vadd.f32 %v395_v19, %v393_v18 }
  0xe7   : > { %v400_v24 = vadd.f32 %v396_v21, %v394_v20  ;;  %v405_v26 = vadd.f32 %v401_v23, %v399_v22  ;;  %v813_v20 = vld [vmem:[%s1119_s5 + $0x4] sm:$0xf] }
  0xe9   : > { %v406_v27 = vadd.f32 %v402_v25, %v400_v24  ;;  %v408_v28 = vsel %vm407_vm1, %v405_v26, -inf }
  0xeb   : > { %v409_v29 = vsel %vm407_vm1, %v406_v27, -inf }
  0xec   : > { %v410_v30 = vmax.f32 %v408_v28, %v409_v29 }
  0xee   : > { %411 = vmax.xlane.f32.xlu0 %v410_v30 }
 0x177   : > { %v412_v31 = vpop.xlane.xlu0 %411 }
 0x178   : > { %v413_v32 = vsub.f32 %v405_v26, %v412_v31  ;;  %v414_v33 = vsub.f32 %v406_v27, %v412_v31 }
 0x17a   : > { %v415_v34 = vmul.f32 1.442695, %v413_v32  ;;  %v417_v35 = vmul.f32 1.442695, %v414_v33 }
 0x17c   : > { %868 = vpow2.f32 %v415_v34 }
 0x17d   : > { %870 = vpow2.f32 %v417_v35 }
 0x189   : > { %v869_v36 = vpop.eup %868 }
 0x18a   : > { %v871_v37 = vpop.eup %870  ;;  %v419_v38 = vsel %vm407_vm1, %v869_v36, 0.0 }
 0x18b   : > { %v420_v39 = vsel %vm407_vm1, %v871_v37, 0.0 }
 0x18c   : > { %v421_v40 = vadd.f32 %v420_v39, %v419_v38 }
 0x18e   : > { %422 = vadd.xlane.f32.xlu1 %v421_v40 }
 0x19f   : > { %292 = vperm.xlu1 %867, %v280_v41  }
 0x1a3   : > { %529 = vperm.xlu1 %867, %v282_v42  }
 0x1a7   : > { %541 = vperm.xlu1 %867, %v538_v43  }
 0x1ab   : > { %634 = vperm.xlu1 %867, %v814_v44  }
 0x217   : > { %v423_v45 = vpop.xlane.xlu1 %422 }
 0x218   : > { %872 = vrcp.f32 %v423_v45 }
 0x21b   : > { %v293_v54 = vpop.permute.xlu1 %292 }
 0x21c   : > { %v375_v55 = vadd.f32 %v374_v48, %v293_v54  ;;  %v377_v57 = vadd.f32 %v376_v51, %v293_v54 }
 0x21f   : > { %v530_v0 = vpop.permute.xlu1 %529 }
 0x220   : > { %v531_v3 = vrot.slane %v530_v0, 4 }
 0x223   : > { %v542_v14 = vpop.permute.xlu1 %541 }
 0x225   : > { %v873_v50 = vpop.eup %872 }
 0x226   : > { %v425_v52 = vmul.f32 %v873_v50, %v869_v36  ;;  %v426_v53 = vmul.f32 %v873_v50, %v871_v37 }
 0x227   : > { %v635_v21 = vpop.permute.xlu1 %634 }
 0x228   : > { %v430_v56 = vrot.slane %v425_v52, %v429_v49  ;;  %v434_v58 = vrot.slane %v426_v53, %v429_v49 }
 0x22a   : > { %v435_v59 = vmul.f32 %v430_v56, %v375_v55  ;;  %v436_v60 = vmul.f32 %v434_v58, %v377_v57 }
 0x22c   : > { %807 = vmatprep.subr.msk.mxu1 %vm441_vm2, %v436_v60 }
 0x22d   : > { %808 = vmatpush1.msk.msra.mxu1 %vm441_vm2, %v435_v59 }
 0x22e   : > { %809 = vmatmul.mubr.msk.f32.vlgmr.msra.gmra.mxu1 %vm437_vm3, %v281_v61 }
 0x22f   : > { %619 = vmatprep.mubr.f32.mxu1 %v936_v1 }
 0x2ee   : > { %v514_v62 = vpop.f32.mrf.mxu1 }
 0x2ef   : > { %v521_v63 = vrot.slane %v514_v62, 4 }
 0x2f0   : > { %v516_v2 = vpop.f32.mrf.mxu1 }
 0x2f1   : > { %v525_v4 = vadd.f32 %v521_v63, %v375_v55  ;;  %v522_v5 = vrot.slane %v516_v2, 4 }
 0x2f3   : > { %v533_v6 = vadd.f32 %v531_v3, %v525_v4  ;;  %v526_v7 = vadd.f32 %v522_v5, %v377_v57 }
 0x2f5   : > { %v534_v8 = vadd.f32 %v531_v3, %v526_v7  ;;  %v535_v9 = vmax.f32 %v533_v6, 0.0 }
 0x2f7   : > { %v536_v10 = vmax.f32 %v534_v8, 0.0  ;;  %v546_v12 = vrot.slane %v535_v9, 4 }
 0x2f9   : > { %v547_v11 = vrot.slane %v536_v10, 4 }
 0x2fb   : > { %810 = vmatprep.subr.msk.mxu1 %vm441_vm2, %v547_v11 }
 0x2fc   : > { %811 = vmatpush1.msk.msra.mxu1 %vm441_vm2, %v546_v12 }
 0x2fd   : > { %812 = vmatmul.mubr.msk.f32.vlgmr.msra.gmra.mxu1 %vm437_vm3, %v537_v13 }
 0x3bd   : > { %v621_v1 = vpop.f32.mrf.mxu1 }
 0x3be   : > { %v622_v15 = vadd.f32 %v621_v1, %v542_v14 }
 0x3bf   : > { %v623_v16 = vpop.f32.mrf.mxu1 }
 0x3c0   : > { %v624_v17 = vadd.f32 %v623_v16, %v542_v14  ;;  %v626_v19 = vmax.f32 %v622_v15, 0.0 }
 0x3c2   : > { %v627_v18 = vmax.f32 %v624_v17, 0.0 }
 0x3c4   : > { %815 = vmatprep.subr.msk.mxu0 %vm441_vm2, %v627_v18 }
 0x3c5   : > { %816 = vmatpush1.msk.msra.mxu0 %vm441_vm2, %v626_v19 }
 0x3c6   : > { %817 = vmatmul.mubr.msk.f32.vlgmr.msra.gmra.mxu0 %vm437_vm3, %v813_v20 }
 0x486   : > { %v712_v22 = vpop.f32.mrf.mxu0 }
 0x487   : > { %v713_v23 = vadd.f32 %v712_v22, %v635_v21 }
 0x488   : > { %v714_v24 = vpop.f32.mrf.mxu0 }
 0x489   : > { %v715_v25 = vadd.f32 %v714_v24, %v635_v21  ;;  %v717_v26 = vmax.f32 %v713_v23, 0.0 }
 0x48b   : > { %v718_v27 = vmax.f32 %v715_v25, 0.0 }
 0x48d   : > { %v721_v28 = vcombine.low %v717_v26, %v718_v27 }
 0x48f   : > { %723 = vst [vmem:[%s271_s13] sm:$0xff] %v721_v28 }
 0x490   : > { %887 = shalt.err (!%p884_p3)
}
 0x491   : > { %s888_s22 = scalar_lea.hbm %s737_s17, 128  ;;  %s892_s8 = scalar_lea.hbm %s1121_s7, 256 }
 0x492   : > { %p889_p4 = scmp.ne.s32.totalorder %s737_s17, %s888_s22  ;;  %p893_p9 = scmp.lt.s32.totalorder %s737_s17, %s1121_s7 }
 0x493   : > { %p894_p10 = scmp.lt.s32.totalorder %s892_s8, %s888_s22 }
 0x494   : > { %p890_p7 = pnand %p889_p4, %p1017_p5 }
 0x495   : > { %p895_p11 = por %p894_p10, %p893_p9 }
 0x496   : > { %p891_p8 = pneg %p890_p7 }
 0x498   : > { %p896_p12 = pnand %p895_p11, %p891_p8 }
 0x49a   : > { %899 = shalt.err (!%p896_p12)
}
 0x49b   : > { %825 = dma.vmem_to_hbm [thread:$0]  (%p1017_p5), %s740_s14, 128, %s737_s17, %s725_s18  }
 0x49c PF: > { %p831_p13 = scmp.ge.s32.totalorder %s934_s27, 2  ;;  %s751_s15 = sand.u32 1, %s922_s24  }
 0x49d   : > { %s752_s16 = scalar_lea.sflag [#allocation3], %s751_s15 }
 0x49e   : > { %p828_p0 = pnand %p831_p13, %p1021_p6 }
 0x4a0   : > { %p829_p1 = pneg %p828_p0 }
 0x4a2   : > { %917 = dma.done.wait (%p829_p1), %s752_s16, 128  }
 0x4a3   : > { %919 = vsyncadd (%p829_p1), %s752_s16, 4294967168  ;;  %p17_p2 = scmp.ge.s32.totalorder %s1004_s30, 4   ;;  %s1124_s24 = smov %s926_s25 }
 0x4a4   : > { %s1125_s25 = smov %s930_s26  ;;  %s1126_s26 = smov %s1015_s10 }
 0x4a5   : > { %s1127_s27 = smov %s1004_s30  ;;  %19 = sbr.rel (!%p17_p2) target bundleno = 3 (0x3), region = 85 }
 0x4aa   :  { %757 = vsyncpa [#allocation3], 1 }
 0x4ab   :  { %759 = vsyncpa [#allocation3 + $0x1], 1 }

</bundles_post_ra>
